<compile_context>
chip_gen: v6e
topology: v6e:2x2x1
jax: 0.10.0
libtpu: 0.0.40
codegen_flags: <defaults>
</compile_context>

<pallas_src>
import functools

import jax
import jax.numpy as jnp
from jax import lax
from jax.experimental import pallas as pl
from jax.experimental.pallas import tpu as pltpu


def _round_up(a: int, b: int) -> int:
    return (a + b - 1) // b * b


def _block_spec(shape, index_map, buffers=None):
    """BlockSpec with optional buffer-count hint; falls back if unsupported."""
    if buffers is None:
        return pl.BlockSpec(shape, index_map)
    try:
        return pl.BlockSpec(shape, index_map, pipeline_mode=pl.Buffered(buffers))
    except TypeError:  # older jax without pipeline_mode kwarg
        return pl.BlockSpec(shape, index_map)


def _fused_head_kernel(x_ref, w_ref, b_ref, out_ref):
    # x_ref:   (tile_n, d_k)       batch tile of the input
    # w_ref:   (d_k, col_tile)     fused-head weight tile ([w_mu | w_lv] packed)
    # b_ref:   (1, col_tile)       fused-head bias tile
    # out_ref: (tile_n, col_tile)  fused [mu | logvar] output tile
    out_ref[...] = (
        jnp.dot(
            x_ref[...],
            w_ref[...],
            preferred_element_type=jnp.float32,
            precision=lax.Precision.HIGHEST,
        )
        + b_ref[...]
    ).astype(out_ref.dtype)


@functools.partial(jax.jit, static_argnames=("tile_n",))
def mu_sigma_encoder(x, w_mu, b_mu, w_lv, b_lv, *, tile_n=512):
    """Pallas forward of MuSigmaEncoder.

    x:     (N, D) f32      (D == latent_dim; fc_mu/fc_logvar act directly on x)
    w_mu:  (D, D) f32      fc_mu weight, (in, out) layout
    b_mu:  (D,)   f32
    w_lv:  (D, D) f32      fc_logvar weight, (in, out) layout
    b_lv:  (D,)   f32
    returns (mu, logvar), each (N, D) f32
    """
    # TODO(synk): the encoder MLP's output `h` is discarded by forward() and the
    # MLP class is not defined in the spec, so it is intentionally not computed
    # here; this cannot change the returned (mu, logvar).
    N, D = x.shape
    itemsize = 4  # f32

    # ---- contiguous fused-head packing: cols [0, D) = mu, [D, 2D) = logvar ----
    cols = 2 * D
    cols_pad = _round_up(cols, 128)       # pad the fused column axis ONCE
    d_k = _round_up(D, 8)                 # contraction axis (sublane multiple)

    w = jnp.concatenate([w_mu, w_lv], axis=1)             # (D, 2D)
    b = jnp.concatenate([b_mu, b_lv], axis=0)[None, :]    # (1, 2D)
    if (cols_pad != cols) or (d_k != D):
        w = jnp.pad(w, ((0, d_k - D), (0, cols_pad - cols)))
        b = jnp.pad(b, ((0, 0), (0, cols_pad - cols)))

    xp = x if d_k == D else jnp.pad(x, ((0, 0), (0, d_k - D)))
    n_pad = _round_up(N, 8)
    if n_pad != N:
        xp = jnp.pad(xp, ((0, n_pad - N), (0, 0)))

    # ---- batch tile: collapse to a single grid step when the batch fits ----
    tile_n = max(8, min(_round_up(tile_n, 8), n_pad))

    # ---- generation-aware VMEM budget (v5e/v6e: 128 MiB, v7x: 64 MiB) -------
    try:
        vmem_cap = int(pltpu.get_tpu_info().vmem_capacity_bytes)
    except Exception:
        vmem_cap = 64 << 20               # conservative (v7x) if query missing
    budget = int(0.85 * vmem_cap)         # leave headroom for compiler scratch

    def plan_bytes(tn, ct, ctiles):
        w_bufs = 1 if ctiles == 1 else 2  # grid-invariant weights: single buffer
        return itemsize * (w_bufs * (d_k + 8) * ct + 2 * tn * (d_k + ct))

    # Fallback 1: column-tile the fused weight if it cannot stay resident.
    col_tile, c_tiles = cols_pad, 1
    while plan_bytes(tile_n, col_tile, c_tiles) > budget and col_tile > 128:
        c_tiles += 1
        col_tile = _round_up(pl.cdiv(cols_pad, c_tiles), 128)
    # Fallback 2: shrink the batch tile.
    while plan_bytes(tile_n, col_tile, c_tiles) > budget and tile_n > 8:
        tile_n = max(8, _round_up(tile_n // 2, 8))

    n_tiles = pl.cdiv(n_pad, tile_n)
    c_tiles = pl.cdiv(cols_pad, col_tile)

    vmem_limit = min(
        max(int(1.25 * plan_bytes(tile_n, col_tile, c_tiles)) + (4 << 20), 8 << 20),
        budget,
    )

    # Columns outer / batch inner: a weight column tile stays resident across
    # all inner batch steps; with c_tiles == 1 the weights are loaded exactly
    # once. Batch axis marked "parallel" so megacore (v7x) can shard it.
    w_buffers = 1 if c_tiles == 1 else None
    grid = (c_tiles, n_tiles)

    out = pl.pallas_call(
        _fused_head_kernel,
        out_shape=jax.ShapeDtypeStruct((n_pad, cols_pad), jnp.float32),
        grid=grid,
        in_specs=[
            _block_spec((tile_n, d_k), lambda j, i: (i, 0)),                    # x
            _block_spec((d_k, col_tile), lambda j, i: (0, j), buffers=w_buffers),  # W
            _block_spec((1, col_tile), lambda j, i: (0, j), buffers=w_buffers),    # b
        ],
        out_specs=pl.BlockSpec((tile_n, col_tile), lambda j, i: (i, j)),
        compiler_params=pltpu.CompilerParams(
            dimension_semantics=("arbitrary", "parallel"),
            vmem_limit_bytes=vmem_limit,
        ),
        cost_estimate=pl.CostEstimate(
            flops=2 * n_pad * d_k * cols_pad,
            bytes_accessed=itemsize
            * (n_pad * d_k + d_k * cols_pad + cols_pad + n_pad * cols_pad),
            transcendentals=0,
        ),
    )(xp, w, b)

    mu = out[:N, :D]
    logvar = out[:N, D:2 * D]
    return mu, logvar


if __name__ == "__main__":
    key = jax.random.PRNGKey(0)
    k_x, k0, k1, k2, k3 = jax.random.split(key, 5)

    N = 16   # batch
    D = 32   # latent_dim == feature dim of x (fc_mu/fc_logvar act directly on x)

    bound = 1.0 / float(D) ** 0.5   # PyTorch-like uniform fan-in init
    x = jax.random.normal(k_x, (N, D), jnp.float32)
    w_mu = jax.random.uniform(k0, (D, D), jnp.float32, -bound, bound)
    b_mu = jax.random.uniform(k1, (D,), jnp.float32, -bound, bound)
    w_lv = jax.random.uniform(k2, (D, D), jnp.float32, -bound, bound)
    b_lv = jax.random.uniform(k3, (D,), jnp.float32, -bound, bound)

    mu, logvar = mu_sigma_encoder(x, w_mu, b_mu, w_lv, b_lv)
    jax.block_until_ready((mu, logvar))

    # Reference check in plain JAX (same math as the PyTorch forward()).
    mu_ref = jnp.dot(x, w_mu, precision=lax.Precision.HIGHEST) + b_mu
    lv_ref = jnp.dot(x, w_lv, precision=lax.Precision.HIGHEST) + b_lv
    assert mu.shape == (N, D) and logvar.shape == (N, D)
    assert jnp.allclose(mu, mu_ref, atol=1e-4, rtol=1e-4)
    assert jnp.allclose(logvar, lv_ref, atol=1e-4, rtol=1e-4)

    print("KERNEL_OK")
</pallas_src>

<mosaic_0001>
module attributes {stable_mosaic.version = 11 : i64} {
  func.func @_fused_head_kernel(%arg0: i32, %arg1: i32, %arg2: memref<16x32xf32, #tpu.memory_space<vmem>>, %arg3: memref<32x128xf32, #tpu.memory_space<vmem>>, %arg4: memref<1x128xf32, #tpu.memory_space<vmem>>, %arg5: memref<16x128xf32, #tpu.memory_space<vmem>>) attributes {dimension_semantics = [#tpu.dimension_semantics<arbitrary>, #tpu.dimension_semantics<parallel>], iteration_bounds = array<i64: 1, 1>, scalar_prefetch = 0 : i64, scratch_operands = 0 : i64, tpu.core_type = #tpu.core_type<tc>, window_params = [{transform_indices = @transform_0, window_bounds = array<i64: 16, 32>}, {pipeline_mode = #tpu.pipeline_mode<synchronous>, transform_indices = @transform_1, window_bounds = array<i64: 32, 128>}, {pipeline_mode = #tpu.pipeline_mode<synchronous>, transform_indices = @transform_2, window_bounds = array<i64: 1, 128>}, {transform_indices = @transform_3, window_bounds = array<i64: 16, 128>}]} {
    %c0 = arith.constant 0 : index
    %c0_0 = arith.constant 0 : index
    %0 = vector.load %arg2[%c0, %c0_0] : memref<16x32xf32, #tpu.memory_space<vmem>>, vector<16x32xf32>
    %c0_1 = arith.constant 0 : index
    %c0_2 = arith.constant 0 : index
    %1 = vector.load %arg3[%c0_1, %c0_2] : memref<32x128xf32, #tpu.memory_space<vmem>>, vector<32x128xf32>
    %cst = arith.constant dense<0.000000e+00> : vector<16x128xf32>
    %2 = tpu.matmul %0, %1, %cst {dimension_numbers = #tpu.dot_dimension_numbers<[1], [0], [0], [1], [0, 0, 1, 1], [], []>, precision = #tpu.contract_precision<fp32>} : vector<16x32xf32>, vector<32x128xf32>, vector<16x128xf32> -> vector<16x128xf32>
    %c0_3 = arith.constant 0 : index
    %c0_4 = arith.constant 0 : index
    %3 = vector.load %arg4[%c0_3, %c0_4] : memref<1x128xf32, #tpu.memory_space<vmem>>, vector<1x128xf32>
    %4 = vector.broadcast %3 : vector<1x128xf32> to vector<16x128xf32>
    %5 = arith.addf %2, %4 : vector<16x128xf32>
    %c0_5 = arith.constant 0 : index
    %c0_6 = arith.constant 0 : index
    %6 = vector.load %arg5[%c0_5, %c0_6] : memref<16x128xf32, #tpu.memory_space<vmem>>, vector<16x128xf32>
    tpu.vector_store %arg5[%c0_5, %c0_6], %5 {strides = array<i32>} : memref<16x128xf32, #tpu.memory_space<vmem>>, vector<16x128xf32>,
    return
  }
  func.func @transform_0(%arg0: i32, %arg1: i32) -> (i32, i32) {
    %c0_i32 = arith.constant 0 : i32
    %c0_i32_0 = arith.constant 0 : i32
    return %arg1, %c0_i32 : i32, i32
  }
  func.func @transform_1(%arg0: i32, %arg1: i32) -> (i32, i32) {
    %c0_i32 = arith.constant 0 : i32
    %c0_i32_0 = arith.constant 0 : i32
    return %c0_i32, %arg0 : i32, i32
  }
  func.func @transform_2(%arg0: i32, %arg1: i32) -> (i32, i32) {
    %c0_i32 = arith.constant 0 : i32
    %c0_i32_0 = arith.constant 0 : i32
    return %c0_i32, %arg0 : i32, i32
  }
  func.func @transform_3(%arg0: i32, %arg1: i32) -> (i32, i32) {
    %c0_i32 = arith.constant 0 : i32
    return %arg1, %arg0 : i32, i32
  }
}

</mosaic_0001>

<bundles_post_ra>
// kernel: mu_sigma_encoder.1
= control target key start
LH: loop header
LB: loop body
LE: loop exit
PB: predicated region body
PF: predicated region fallthrough
CT: control target
= control target key end

     0   :  { %vm27_vm0 = vcmask 261120   ;;  %s766_s1 = inlined_call_operand.vmem [shape: f32[32,128], index: 1, kind: input, shape index: {}]   ;;  %s767_s0 = inlined_call_operand.vmem [shape: f32[16,32], index: 0, kind: input, shape index: {}]   ;;  %s768_s2 = inlined_call_operand.vmem [shape: f32[1,128], index: 2, kind: input, shape index: {}]   ;;  %s769_s3 = inlined_call_operand.vmem [shape: f32[16,128], index: 3, kind: output, shape index: {}]  }
   0x1   :  { %v19_v0 = vld [vmem:[%s766_s1 + $0x18] sm:$0xff]  ;;  %v18_v1 = vld [vmem:[%s766_s1 + $0x10] sm:$0xff]  ;;  %v17_v2 = vld [vmem:[%s766_s1 + $0x8] sm:$0xff] }
   0x2   :  { %v700_v3 = vand.u32 4294901760, %v19_v0  ;;  %v702_v4 = vand.u32 4294901760, %v18_v1  ;;  %v704_v5 = vand.u32 4294901760, %v17_v2  ;;  %v16_v6 = vld [vmem:[%s766_s1] sm:$0xff]  ;;  %v15_v8 = vld [vmem:[%s767_s0 + $0x8] sm:$0xff] }
   0x3   :  { %v14_v7 = vld [vmem:[%s767_s0] sm:$0xff]  ;;  %v715_v9 = vand.u32 4294901760, %v16_v6  ;;  %v32_v11 = vsel %vm27_vm0, %v15_v8, 0 }
   0x4   :  { %v29_v10 = vsel %vm27_vm0, %v14_v7, 0  ;;  %605 = vmatprep.subr.mxu0 %v700_v3  ;;  %v149_v12 = vsub.f32 %v19_v0, %v700_v3  ;;  %v721_v14 = vand.u32 4294901760, %v32_v11  ;;  %v156_v15 = vsub.f32 %v18_v1, %v702_v4  ;;  %v568_v39 = vld [vmem:[%s768_s2] ss:$0 sm:$0xff] }
   0x5   :  { %v719_v13 = vand.u32 4294901760, %v29_v10  ;;  %606 = vmatpush3.msra.mxu0 %v700_v3  ;;  %v163_v16 = vsub.f32 %v17_v2, %v704_v5  ;;  %v170_v17 = vsub.f32 %v16_v6, %v715_v9 }
   0x6   :  { %607 = vmatprep.subr.mxu0 %v702_v4  ;;  %v150_v18 = vand.u32 4294901760, %v149_v12  ;;  %v157_v20 = vand.u32 4294901760, %v156_v15  ;;  %v114_v21 = vsub.f32 %v32_v11, %v721_v14 }
   0x7   :  { %v104_v19 = vsub.f32 %v29_v10, %v719_v13  ;;  %624 = vmatprep.mubr.f32.mxu1 %v719_v13  ;;  %608 = vmatpush3.msra.mxu0 %v702_v4  ;;  %v164_v22 = vand.u32 4294901760, %v163_v16  ;;  %v171_v23 = vand.u32 4294901760, %v170_v17 }
   0x8   :  { %609 = vmatprep.subr.mxu0 %v704_v5  ;;  %v151_v24 = vsub.f32 %v149_v12, %v150_v18  ;;  %v158_v26 = vsub.f32 %v156_v15, %v157_v20  ;;  %v115_v27 = vand.u32 4294901760, %v114_v21 }
   0x9   :  { %v105_v25 = vand.u32 4294901760, %v104_v19  ;;  %610 = vmatpush3.msra.mxu0 %v704_v5  ;;  %v165_v28 = vsub.f32 %v163_v16, %v164_v22  ;;  %v172_v29 = vsub.f32 %v170_v17, %v171_v23 }
   0xa   :  { %611 = vmatprep.subr.mxu0 %v715_v9  ;;  %v152_v30 = vand.u32 4294901760, %v151_v24  ;;  %v159_v32 = vand.u32 4294901760, %v158_v26  ;;  %v116_v33 = vsub.f32 %v114_v21, %v115_v27 }
   0xb   :  { %v106_v31 = vsub.f32 %v104_v19, %v105_v25  ;;  %612 = vmatpush3.msra.mxu0 %v715_v9  ;;  %v166_v36 = vand.u32 4294901760, %v165_v28  ;;  %v173_v37 = vand.u32 4294901760, %v172_v29 }
   0xc   :  { %616 = vmatprep.subr.mxu1 %v152_v30  ;;  %627 = vmatprep.subr.mxu0 %v149_v12  ;;  %v117_v35 = vand.u32 4294901760, %v116_v33 }
   0xd   :  { %v107_v34 = vand.u32 4294901760, %v106_v31  ;;  %617 = vmatpush3.msra.mxu1 %v152_v30 }
   0xe   :  { %618 = vmatprep.subr.mxu1 %v159_v32 }
   0xf   :  { %613 = vmatprep.mubr.f32.mxu0 %v107_v34  ;;  %619 = vmatpush3.msra.mxu1 %v159_v32 }
  0x10   :  { %614 = vmatmul.mubr.f32.vlgmr.msra.gmra.mxu0 %v117_v35  ;;  %620 = vmatprep.subr.mxu1 %v166_v36 }
  0x11   :  { %628 = vmatpush3.msra.mxu0 %v149_v12  ;;  %621 = vmatpush3.msra.mxu1 %v166_v36 }
  0x12   :  { %629 = vmatprep.subr.mxu0 %v156_v15  ;;  %622 = vmatprep.subr.mxu1 %v173_v37 }
  0x13   :  { %630 = vmatpush3.msra.mxu0 %v156_v15  ;;  %623 = vmatpush3.msra.mxu1 %v173_v37 }
  0x14   :  { %631 = vmatprep.subr.mxu0 %v163_v16  ;;  %625 = vmatmul.mubr.f32.vlgmr.msra.gmra.mxu1 %v721_v14 }
  0x15   :  { %632 = vmatpush3.msra.mxu0 %v163_v16  ;;  %638 = vmatprep.subr.mxu1 %v700_v3 }
  0x16   :  { %633 = vmatprep.subr.mxu0 %v170_v17  ;;  %635 = vmatprep.mubr.f32.mxu0 %v104_v19 }
  0x17   :  { %634 = vmatpush3.msra.mxu0 %v170_v17  ;;  %639 = vmatpush3.msra.mxu1 %v700_v3 }
  0x18   :  { %636 = vmatmul.mubr.f32.vlgmr.msra.gmra.mxu0 %v114_v21  ;;  %640 = vmatprep.subr.mxu1 %v702_v4 }
  0x19   :  { %649 = vmatprep.subr.mxu0 %v150_v18  ;;  %641 = vmatpush3.msra.mxu1 %v702_v4 }
  0x1a   :  { %650 = vmatpush3.msra.mxu0 %v150_v18  ;;  %642 = vmatprep.subr.mxu1 %v704_v5 }
  0x1b   :  { %651 = vmatprep.subr.mxu0 %v157_v20  ;;  %643 = vmatpush3.msra.mxu1 %v704_v5 }
  0x1c   :  { %652 = vmatpush3.msra.mxu0 %v157_v20  ;;  %644 = vmatprep.subr.mxu1 %v715_v9 }
  0x1d   :  { %653 = vmatprep.subr.mxu0 %v164_v22  ;;  %645 = vmatpush3.msra.mxu1 %v715_v9 }
  0x1e   :  { %646 = vmatprep.mubr.f32.mxu1 %v105_v25  ;;  %654 = vmatpush3.msra.mxu0 %v164_v22 }
  0x1f   :  { %647 = vmatmul.mubr.f32.vlgmr.msra.gmra.mxu1 %v115_v27  ;;  %655 = vmatprep.subr.mxu0 %v171_v23 }
  0x20   :  { %660 = vmatprep.subr.mxu1 %v700_v3  ;;  %656 = vmatpush3.msra.mxu0 %v171_v23 }
  0x21   :  { %657 = vmatprep.mubr.f32.mxu0 %v719_v13  ;;  %661 = vmatpush3.msra.mxu1 %v700_v3 }
  0x22   :  { %658 = vmatmul.mubr.f32.vlgmr.msra.gmra.mxu0 %v721_v14  ;;  %662 = vmatprep.subr.mxu1 %v702_v4 }
  0x23   :  { %668 = vmatprep.mubr.f32.mxu1 %v719_v13  ;;  %663 = vmatpush3.msra.mxu1 %v702_v4 }
  0x24   :  { %664 = vmatprep.subr.mxu1 %v704_v5 }
  0x25   :  { %665 = vmatpush3.msra.mxu1 %v704_v5 }
  0x26   :  { %666 = vmatprep.subr.mxu1 %v715_v9 }
  0x27   :  { %667 = vmatpush3.msra.mxu1 %v715_v9 }
  0x28   :  { %669 = vmatmul.mubr.f32.vlgmr.msra.gmra.mxu1 %v721_v14 }
  0xd0   :  { %v615_v38 = vpop.f32.mrf.mxu0 }
  0xd1   :  { %v120_v42 = vadd.f32 %v615_v38, %v568_v39 }
  0xd2   :  { %v109_v40 = vpop.f32.mrf.mxu0 }
  0xd3   :  { %v110_v43 = vadd.f32 %v568_v39, %v109_v40 }
  0xd4   :  { %v626_v41 = vpop.f32.mrf.mxu1 }
  0xd5   :  { %v217_v46 = vadd.f32 %v626_v41, %v120_v42 }
  0xd6   :  { %v210_v44 = vpop.f32.mrf.mxu1 }
  0xd7   :  { %v211_v48 = vadd.f32 %v210_v44, %v110_v43 }
  0xd8   :  { %v637_v45 = vpop.f32.mrf.mxu0 }
  0xd9   :  { %v304_v50 = vadd.f32 %v637_v45, %v217_v46 }
  0xda   :  { %v296_v49 = vpop.f32.mrf.mxu0 }
  0xdb   :  { %v297_v53 = vadd.f32 %v296_v49, %v211_v48 }
  0xdf   :  { %v648_v47 = vpop.f32.mrf.mxu1 }
  0xe0   :  { %v389_v54 = vadd.f32 %v648_v47, %v304_v50 }
  0xe1   :  { %v380_v51 = vpop.f32.mrf.mxu1 }
  0xe2   :  { %v659_v52 = vpop.f32.mrf.mxu0  ;;  %v381_v55 = vadd.f32 %v380_v51, %v297_v53 }
  0xe3   :  { %v478_v57 = vadd.f32 %v659_v52, %v389_v54 }
  0xe4   :  { %v471_v56 = vpop.f32.mrf.mxu0 }
  0xe5   :  { %v472_v59 = vadd.f32 %v471_v56, %v381_v55 }
  0xe8   :  { %v670_v58 = vpop.f32.mrf.mxu1 }
  0xe9   :  { %v559_v60 = vadd.f32 %v670_v58, %v478_v57 }
  0xea   :  { %v552_v61 = vpop.f32.mrf.mxu1 }
  0xeb   :  { %563 = vst [vmem:[%s769_s3 + $0x8] sm:$0xff] %v559_v60  ;;  %v553_v62 = vadd.f32 %v552_v61, %v472_v59 }
  0xed   :  { %562 = vst [vmem:[%s769_s3] sm:$0xff] %v553_v62 }

</bundles_post_ra>
